<compile_context>
chip_gen: v6e
topology: v6e:2x2x1
jax: 0.10.0
libtpu: 0.0.40
codegen_flags: <defaults>
</compile_context>

<pallas_src>
import jax
import jax.numpy as jnp
from jax.experimental import pallas as pl
from jax.experimental.pallas import tpu as pltpu


def _round_up(x, m):
    return ((x + m - 1) // m) * m


def _accumulate_counts(data_ref, tb, L, tv, v_tile):
    """Bag-of-words counts for this vocab tile via per-position 2D compares.

    Pure VALU work: a (tb, 1) == (1, tv) broadcast compare per position, no
    3-D one-hot temporary and no cross-sublane reduction.  L is small and
    static, so a fully-unrolled Python loop keeps every slice static.
    """
    vocab_ids = jax.lax.broadcasted_iota(jnp.int32, (1, tv), 1) + v_tile * tv
    counts = jnp.zeros((tb, tv), jnp.float32)
    for l in range(L):
        tok = data_ref[:, l:l + 1]                                  # (tb, 1) int32
        counts = counts + (tok == vocab_ids).astype(jnp.float32)    # (tb, tv)
    return counts


def bow_fused_kernel(data_ref, length_ref, table_ref, b_ref, out_ref, acc_ref):
    """Fused path: table_ref = emb @ W^T (V tile, O_pad).  acc is (tb, O_pad)."""
    v = pl.program_id(1)
    nv = pl.num_programs(1)
    tb, L = data_ref.shape
    tv = table_ref.shape[0]

    @pl.when(v == 0)
    def _init():
        acc_ref[...] = jnp.zeros_like(acc_ref)

    counts = _accumulate_counts(data_ref, tb, L, tv, v)
    # counts are small exact integers -> exact in bf16; accumulate in f32.
    acc_ref[...] += jnp.dot(counts.astype(table_ref.dtype), table_ref[...],
                            preferred_element_type=jnp.float32)

    @pl.when(v == nv - 1)
    def _finalize():
        inv_len = pl.reciprocal(length_ref[...].astype(jnp.float32), approx=True)
        out_ref[...] = acc_ref[...] * inv_len + b_ref[...]


def bow_kernel(data_ref, length_ref, emb_ref, w_ref, b_ref, out_ref, acc_ref):
    """Unfused path (wide E/O): acc is (tb, E); linear applied at finalize."""
    v = pl.program_id(1)
    nv = pl.num_programs(1)
    tb, L = data_ref.shape
    tv = emb_ref.shape[0]

    @pl.when(v == 0)
    def _init():
        acc_ref[...] = jnp.zeros_like(acc_ref)

    counts = _accumulate_counts(data_ref, tb, L, tv, v)
    acc_ref[...] += jnp.dot(counts.astype(emb_ref.dtype), emb_ref[...],
                            preferred_element_type=jnp.float32)

    @pl.when(v == nv - 1)
    def _finalize():
        lin = jnp.dot(acc_ref[...], w_ref[...], preferred_element_type=jnp.float32)
        inv_len = pl.reciprocal(length_ref[...].astype(jnp.float32), approx=True)
        out_ref[...] = lin * inv_len + b_ref[...]


def bag_of_words_forward(data, length, emb_table, w_t, bias, *,
                         tb=None, tv=None, table_dtype=jnp.bfloat16,
                         fuse_linear=None):
    """data: (B, L) int; length: (B,) int; emb_table: (V, E) f32;
    w_t: (E, O) f32 (PyTorch Linear weight transposed); bias: (O,) f32."""
    B, L = data.shape
    V, E = emb_table.shape
    O = w_t.shape[1]

    # ---- hardware info (generation-aware tiling / VMEM budget) -------------
    try:
        vmem_cap = int(getattr(pltpu.get_tpu_info(), "vmem_capacity_bytes",
                               64 * 1024 * 1024))
    except Exception:
        vmem_cap = 64 * 1024 * 1024              # conservative (v7x per-TC VMEM)
    big_vmem = vmem_cap >= 96 * 1024 * 1024      # v5e/v6e: 128 MiB; v7x: 64 MiB

    O_pad = _round_up(max(O, 128), 128)          # lane-dense output stores
    itemsize = jnp.dtype(table_dtype).itemsize

    if fuse_linear is None:
        # Folding Linear into the table makes the single matmul lane-dense
        # (N = O_pad = 128) and removes the finalize matmul.  Skip it when the
        # fused table (V, O_pad) would blow up vs. (V, E).
        fuse_linear = (O <= 128 and E <= 1024)

    # Batch tile: keep >= 2 batch tiles when possible so v7x's two TensorCores
    # both get work on the "parallel" batch axis.
    if tb is None:
        if B > 8:
            tb = min(128, _round_up(-(-B // 2), 8))
        else:
            tb = _round_up(max(B, 1), 8)
    B_pad = _round_up(B, tb)

    # Vocab tile: larger on 128 MiB parts (fewer grid steps, bigger DMAs);
    # smaller on v7x so double-buffered table tiles stay well inside 64 MiB.
    if tv is None:
        tv_cap = 2048 if big_vmem else 1024      # multiples of 128
        tv = _round_up(V, 8) if V <= tv_cap else tv_cap
    V_pad = _round_up(V, tv)

    width = O_pad if fuse_linear else E

    # ---- padded operands ----------------------------------------------------
    data_p = jnp.zeros((B_pad, L), jnp.int32).at[:B].set(data.astype(jnp.int32))
    length_p = jnp.ones((B_pad, 1), jnp.int32).at[:B, 0].set(length.astype(jnp.int32))
    b_p = jnp.zeros((1, O_pad), jnp.float32).at[0, :O].set(bias.astype(jnp.float32))
    if fuse_linear:
        fused = emb_table.astype(jnp.float32) @ w_t.astype(jnp.float32)   # (V, O)
        table_p = jnp.zeros((V_pad, O_pad), table_dtype).at[:V, :O].set(
            fused.astype(table_dtype))
    else:
        table_p = jnp.zeros((V_pad, E), table_dtype).at[:V].set(
            emb_table.astype(table_dtype))
        w_p = jnp.zeros((E, O_pad), jnp.float32).at[:, :O].set(
            w_t.astype(jnp.float32))

    grid = (B_pad // tb, V_pad // tv)            # vocab (reduction) innermost

    # ---- VMEM budget + cost hint --------------------------------------------
    def _vmem_tile(r, c, isz):                   # rough lane/sublane-padded bytes
        return _round_up(r, 8) * _round_up(c, 128) * isz

    tile_bytes = (_vmem_tile(tb, L, 4) + _vmem_tile(tb, 1, 4)
                  + _vmem_tile(tv, width, itemsize)
                  + _vmem_tile(1, O_pad, 4) + _vmem_tile(tb, O_pad, 4))
    if not fuse_linear:
        tile_bytes += _vmem_tile(E, O_pad, 4)
    acc_cols = O_pad if fuse_linear else E
    scratch_bytes = _vmem_tile(tb, acc_cols, 4) + 2 * _vmem_tile(tb, tv, 4)
    vmem_budget = 48 * 1024 * 1024 if big_vmem else 28 * 1024 * 1024
    vmem_limit = int(min(vmem_budget,
                         max(8 * 1024 * 1024,
                             2 * tile_bytes + scratch_bytes + (2 << 20))))

    flops = 2 * B_pad * V_pad * width
    if not fuse_linear:
        flops += 2 * B_pad * E * O_pad
    bytes_accessed = (data_p.size * 4 + length_p.size * 4
                      + table_p.size * itemsize + b_p.size * 4
                      + B_pad * O_pad * 4)
    if not fuse_linear:
        bytes_accessed += w_p.size * 4
    cost = pl.CostEstimate(flops=int(flops), transcendentals=int(B_pad),
                           bytes_accessed=int(bytes_accessed))

    compiler_params = pltpu.CompilerParams(
        dimension_semantics=("parallel", "arbitrary"),
        vmem_limit_bytes=vmem_limit,
    )

    if fuse_linear:
        out = pl.pallas_call(
            bow_fused_kernel,
            out_shape=jax.ShapeDtypeStruct((B_pad, O_pad), jnp.float32),
            grid_spec=pltpu.PrefetchScalarGridSpec(
                num_scalar_prefetch=0,
                grid=grid,
                in_specs=[
                    pl.BlockSpec((tb, L), lambda i, v: (i, 0)),        # data
                    pl.BlockSpec((tb, 1), lambda i, v: (i, 0)),        # length
                    pl.BlockSpec((tv, O_pad), lambda i, v: (v, 0)),    # emb@W tile
                    pl.BlockSpec((1, O_pad), lambda i, v: (0, 0)),     # bias
                ],
                out_specs=pl.BlockSpec((tb, O_pad), lambda i, v: (i, 0)),
                scratch_shapes=[pltpu.VMEM((tb, O_pad), jnp.float32)],
            ),
            compiler_params=compiler_params,
            cost_estimate=cost,
        )(data_p, length_p, table_p, b_p)
    else:
        out = pl.pallas_call(
            bow_kernel,
            out_shape=jax.ShapeDtypeStruct((B_pad, O_pad), jnp.float32),
            grid_spec=pltpu.PrefetchScalarGridSpec(
                num_scalar_prefetch=0,
                grid=grid,
                in_specs=[
                    pl.BlockSpec((tb, L), lambda i, v: (i, 0)),        # data
                    pl.BlockSpec((tb, 1), lambda i, v: (i, 0)),        # length
                    pl.BlockSpec((tv, E), lambda i, v: (v, 0)),        # emb tile
                    pl.BlockSpec((E, O_pad), lambda i, v: (0, 0)),     # linear W
                    pl.BlockSpec((1, O_pad), lambda i, v: (0, 0)),     # bias
                ],
                out_specs=pl.BlockSpec((tb, O_pad), lambda i, v: (i, 0)),
                scratch_shapes=[pltpu.VMEM((tb, E), jnp.float32)],
            ),
            compiler_params=compiler_params,
            cost_estimate=cost,
        )(data_p, length_p, table_p, w_p, b_p)

    return out[:B, :O]


if __name__ == "__main__":
    # Small, deterministic problem sizes consistent with the module.
    VOCAB, EMB, NUM_OUT = 64, 32, 4
    BATCH, MAX_LEN = 2, 8

    key = jax.random.PRNGKey(0)
    k_emb, k_w, k_b, k_data, k_len = jax.random.split(key, 5)

    # Parameters. padding_idx=0 -> zero embedding row 0 (as torch initializes it).
    emb_table = jax.random.normal(k_emb, (VOCAB, EMB), dtype=jnp.float32)
    emb_table = emb_table.at[0].set(0.0)
    w = jax.random.normal(k_w, (NUM_OUT, EMB), dtype=jnp.float32) * 0.1  # torch (O, E)
    bias = jax.random.normal(k_b, (NUM_OUT,), dtype=jnp.float32) * 0.1
    w_t = w.T                                                            # kernel (E, O)

    # Inputs: padded token-id matrix (pad token = 0) and true lengths.
    lengths = jax.random.randint(k_len, (BATCH,), 3, MAX_LEN + 1, dtype=jnp.int32)
    raw_ids = jax.random.randint(k_data, (BATCH, MAX_LEN), 1, VOCAB, dtype=jnp.int32)
    pos = jnp.arange(MAX_LEN)[None, :]
    data = jnp.where(pos < lengths[:, None], raw_ids, 0)

    # Pure-JAX reference of the PyTorch forward.
    ref = jnp.take(emb_table, data, axis=0).sum(axis=1)
    ref = ref / lengths[:, None].astype(jnp.float32)
    ref = ref @ w.T + bias

    # f32 table path (tight tolerance), fused and unfused kernels.
    out_f32 = bag_of_words_forward(data, lengths, emb_table, w_t, bias,
                                   table_dtype=jnp.float32)
    out_f32 = jax.block_until_ready(out_f32)
    assert out_f32.shape == ref.shape, (out_f32.shape, ref.shape)
    assert jnp.allclose(out_f32, ref, atol=3e-3, rtol=3e-3), (out_f32, ref)

    out_unfused = bag_of_words_forward(data, lengths, emb_table, w_t, bias,
                                       table_dtype=jnp.float32, fuse_linear=False)
    out_unfused = jax.block_until_ready(out_unfused)
    assert jnp.allclose(out_unfused, ref, atol=3e-3, rtol=3e-3), (out_unfused, ref)

    # Default bf16 table path -- only the table is rounded; counts stay exact.
    out_bf16 = bag_of_words_forward(data, lengths, emb_table, w_t, bias)
    out_bf16 = jax.block_until_ready(out_bf16)
    assert jnp.allclose(out_bf16, ref, atol=5e-2, rtol=5e-2), (out_bf16, ref)

    print("KERNEL_OK")
</pallas_src>

<mosaic_0001>
module attributes {stable_mosaic.version = 11 : i64} {
  func.func @bow_fused_kernel(%arg0: i32, %arg1: i32, %arg2: memref<8x8xi32, #tpu.memory_space<vmem>>, %arg3: memref<8x1xi32, #tpu.memory_space<vmem>>, %arg4: memref<64x128xf32, #tpu.memory_space<vmem>>, %arg5: memref<1x128xf32, #tpu.memory_space<vmem>>, %arg6: memref<8x128xf32, #tpu.memory_space<vmem>>, %arg7: memref<8x128xf32, #tpu.memory_space<vmem>>) attributes {dimension_semantics = [#tpu.dimension_semantics<parallel>, #tpu.dimension_semantics<arbitrary>], iteration_bounds = array<i64: 1, 1>, scalar_prefetch = 0 : i64, scratch_operands = 1 : i64, tpu.core_type = #tpu.core_type<tc>, window_params = [{transform_indices = @transform_0, window_bounds = array<i64: 8, 8>}, {transform_indices = @transform_1, window_bounds = array<i64: 8, 1>}, {transform_indices = @transform_2, window_bounds = array<i64: 64, 128>}, {pipeline_mode = #tpu.pipeline_mode<synchronous>, transform_indices = @transform_3, window_bounds = array<i64: 1, 128>}, {transform_indices = @transform_4, window_bounds = array<i64: 8, 128>}]} {
    %c0_i32 = arith.constant 0 : i32
    %0 = arith.cmpi eq, %arg1, %c0_i32 : i32
    %1 = arith.extui %0 : i1 to i32
    %c0_i32_0 = arith.constant 0 : i32
    %2 = arith.cmpi ne, %1, %c0_i32_0 : i32
    scf.if %2 {
      %cst_18 = arith.constant 0.000000e+00 : f32
      %72 = vector.broadcast %cst_18 : f32 to vector<8x128xf32>
      %c0_19 = arith.constant 0 : index
      %c0_20 = arith.constant 0 : index
      %73 = vector.load %arg7[%c0_19, %c0_20] : memref<8x128xf32, #tpu.memory_space<vmem>>, vector<8x128xf32>
      tpu.vector_store %arg7[%c0_19, %c0_20], %72 {strides = array<i32>} : memref<8x128xf32, #tpu.memory_space<vmem>>, vector<8x128xf32>,
    } else {
    }
    %3 = tpu.iota {dimensions = array<i32: 1>} : vector<1x64xi32>
    %c64_i32 = arith.constant 64 : i32
    %4 = arith.muli %arg1, %c64_i32 : i32
    %5 = vector.broadcast %4 : i32 to vector<1x64xi32>
    %6 = arith.addi %3, %5 : vector<1x64xi32>
    %cst = arith.constant 0.000000e+00 : f32
    %7 = vector.broadcast %cst : f32 to vector<8x64xf32>
    %c0 = arith.constant 0 : index
    %c0_1 = arith.constant 0 : index
    %8 = vector.load %arg2[%c0, %c0_1] : memref<8x8xi32, #tpu.memory_space<vmem>>, vector<8x1xi32>
    %9 = vector.broadcast %8 : vector<8x1xi32> to vector<8x64xi32>
    %10 = vector.broadcast %6 : vector<1x64xi32> to vector<8x64xi32>
    %11 = arith.cmpi eq, %9, %10 : vector<8x64xi32>
    %12 = arith.extui %11 : vector<8x64xi1> to vector<8x64xi32>
    %13 = arith.sitofp %12 : vector<8x64xi32> to vector<8x64xf32>
    %14 = arith.addf %7, %13 : vector<8x64xf32>
    %c0_2 = arith.constant 0 : index
    %c1 = arith.constant 1 : index
    %15 = vector.load %arg2[%c0_2, %c1] : memref<8x8xi32, #tpu.memory_space<vmem>>, vector<8x1xi32>
    %16 = vector.broadcast %15 : vector<8x1xi32> to vector<8x64xi32>
    %17 = vector.broadcast %6 : vector<1x64xi32> to vector<8x64xi32>
    %18 = arith.cmpi eq, %16, %17 : vector<8x64xi32>
    %19 = arith.extui %18 : vector<8x64xi1> to vector<8x64xi32>
    %20 = arith.sitofp %19 : vector<8x64xi32> to vector<8x64xf32>
    %21 = arith.addf %14, %20 : vector<8x64xf32>
    %c0_3 = arith.constant 0 : index
    %c2 = arith.constant 2 : index
    %22 = vector.load %arg2[%c0_3, %c2] : memref<8x8xi32, #tpu.memory_space<vmem>>, vector<8x1xi32>
    %23 = vector.broadcast %22 : vector<8x1xi32> to vector<8x64xi32>
    %24 = vector.broadcast %6 : vector<1x64xi32> to vector<8x64xi32>
    %25 = arith.cmpi eq, %23, %24 : vector<8x64xi32>
    %26 = arith.extui %25 : vector<8x64xi1> to vector<8x64xi32>
    %27 = arith.sitofp %26 : vector<8x64xi32> to vector<8x64xf32>
    %28 = arith.addf %21, %27 : vector<8x64xf32>
    %c0_4 = arith.constant 0 : index
    %c3 = arith.constant 3 : index
    %29 = vector.load %arg2[%c0_4, %c3] : memref<8x8xi32, #tpu.memory_space<vmem>>, vector<8x1xi32>
    %30 = vector.broadcast %29 : vector<8x1xi32> to vector<8x64xi32>
    %31 = vector.broadcast %6 : vector<1x64xi32> to vector<8x64xi32>
    %32 = arith.cmpi eq, %30, %31 : vector<8x64xi32>
    %33 = arith.extui %32 : vector<8x64xi1> to vector<8x64xi32>
    %34 = arith.sitofp %33 : vector<8x64xi32> to vector<8x64xf32>
    %35 = arith.addf %28, %34 : vector<8x64xf32>
    %c0_5 = arith.constant 0 : index
    %c4 = arith.constant 4 : index
    %36 = vector.load %arg2[%c0_5, %c4] : memref<8x8xi32, #tpu.memory_space<vmem>>, vector<8x1xi32>
    %37 = vector.broadcast %36 : vector<8x1xi32> to vector<8x64xi32>
    %38 = vector.broadcast %6 : vector<1x64xi32> to vector<8x64xi32>
    %39 = arith.cmpi eq, %37, %38 : vector<8x64xi32>
    %40 = arith.extui %39 : vector<8x64xi1> to vector<8x64xi32>
    %41 = arith.sitofp %40 : vector<8x64xi32> to vector<8x64xf32>
    %42 = arith.addf %35, %41 : vector<8x64xf32>
    %c0_6 = arith.constant 0 : index
    %c5 = arith.constant 5 : index
    %43 = vector.load %arg2[%c0_6, %c5] : memref<8x8xi32, #tpu.memory_space<vmem>>, vector<8x1xi32>
    %44 = vector.broadcast %43 : vector<8x1xi32> to vector<8x64xi32>
    %45 = vector.broadcast %6 : vector<1x64xi32> to vector<8x64xi32>
    %46 = arith.cmpi eq, %44, %45 : vector<8x64xi32>
    %47 = arith.extui %46 : vector<8x64xi1> to vector<8x64xi32>
    %48 = arith.sitofp %47 : vector<8x64xi32> to vector<8x64xf32>
    %49 = arith.addf %42, %48 : vector<8x64xf32>
    %c0_7 = arith.constant 0 : index
    %c6 = arith.constant 6 : index
    %50 = vector.load %arg2[%c0_7, %c6] : memref<8x8xi32, #tpu.memory_space<vmem>>, vector<8x1xi32>
    %51 = vector.broadcast %50 : vector<8x1xi32> to vector<8x64xi32>
    %52 = vector.broadcast %6 : vector<1x64xi32> to vector<8x64xi32>
    %53 = arith.cmpi eq, %51, %52 : vector<8x64xi32>
    %54 = arith.extui %53 : vector<8x64xi1> to vector<8x64xi32>
    %55 = arith.sitofp %54 : vector<8x64xi32> to vector<8x64xf32>
    %56 = arith.addf %49, %55 : vector<8x64xf32>
    %c0_8 = arith.constant 0 : index
    %c7 = arith.constant 7 : index
    %57 = vector.load %arg2[%c0_8, %c7] : memref<8x8xi32, #tpu.memory_space<vmem>>, vector<8x1xi32>
    %58 = vector.broadcast %57 : vector<8x1xi32> to vector<8x64xi32>
    %59 = vector.broadcast %6 : vector<1x64xi32> to vector<8x64xi32>
    %60 = arith.cmpi eq, %58, %59 : vector<8x64xi32>
    %61 = arith.extui %60 : vector<8x64xi1> to vector<8x64xi32>
    %62 = arith.sitofp %61 : vector<8x64xi32> to vector<8x64xf32>
    %63 = arith.addf %56, %62 : vector<8x64xf32>
    %c0_9 = arith.constant 0 : index
    %c0_10 = arith.constant 0 : index
    %64 = vector.load %arg7[%c0_9, %c0_10] : memref<8x128xf32, #tpu.memory_space<vmem>>, vector<8x128xf32>
    %c0_11 = arith.constant 0 : index
    %c0_12 = arith.constant 0 : index
    %65 = vector.load %arg4[%c0_11, %c0_12] : memref<64x128xf32, #tpu.memory_space<vmem>>, vector<64x128xf32>
    %cst_13 = arith.constant dense<0.000000e+00> : vector<8x128xf32>
    %66 = tpu.matmul %63, %65, %cst_13 {dimension_numbers = #tpu.dot_dimension_numbers<[1], [0], [0], [1], [0, 0, 1, 1], [], []>} : vector<8x64xf32>, vector<64x128xf32>, vector<8x128xf32> -> vector<8x128xf32>
    %67 = arith.addf %64, %66 : vector<8x128xf32>
    %c0_14 = arith.constant 0 : index
    %c0_15 = arith.constant 0 : index
    %68 = vector.load %arg7[%c0_14, %c0_15] : memref<8x128xf32, #tpu.memory_space<vmem>>, vector<8x128xf32>
    tpu.vector_store %arg7[%c0_14, %c0_15], %67 {strides = array<i32>} : memref<8x128xf32, #tpu.memory_space<vmem>>, vector<8x128xf32>,
    %c0_i32_16 = arith.constant 0 : i32
    %69 = arith.cmpi eq, %arg1, %c0_i32_16 : i32
    %70 = arith.extui %69 : i1 to i32
    %c0_i32_17 = arith.constant 0 : i32
    %71 = arith.cmpi ne, %70, %c0_i32_17 : i32
    scf.if %71 {
      %c0_18 = arith.constant 0 : index
      %c0_19 = arith.constant 0 : index
      %72 = vector.load %arg3[%c0_18, %c0_19] : memref<8x1xi32, #tpu.memory_space<vmem>>, vector<8x1xi32>
      %73 = arith.sitofp %72 : vector<8x1xi32> to vector<8x1xf32>
      %74 = tpu.reciprocal %73 {approx = true} : vector<8x1xf32> -> vector<8x1xf32>
      %c0_20 = arith.constant 0 : index
      %c0_21 = arith.constant 0 : index
      %75 = vector.load %arg7[%c0_20, %c0_21] : memref<8x128xf32, #tpu.memory_space<vmem>>, vector<8x128xf32>
      %76 = vector.broadcast %74 : vector<8x1xf32> to vector<8x128xf32>
      %77 = arith.mulf %75, %76 : vector<8x128xf32>
      %c0_22 = arith.constant 0 : index
      %c0_23 = arith.constant 0 : index
      %78 = vector.load %arg5[%c0_22, %c0_23] : memref<1x128xf32, #tpu.memory_space<vmem>>, vector<1x128xf32>
      %79 = vector.broadcast %78 : vector<1x128xf32> to vector<8x128xf32>
      %80 = arith.addf %77, %79 : vector<8x128xf32>
      %c0_24 = arith.constant 0 : index
      %c0_25 = arith.constant 0 : index
      %81 = vector.load %arg6[%c0_24, %c0_25] : memref<8x128xf32, #tpu.memory_space<vmem>>, vector<8x128xf32>
      tpu.vector_store %arg6[%c0_24, %c0_25], %80 {strides = array<i32>} : memref<8x128xf32, #tpu.memory_space<vmem>>, vector<8x128xf32>,
    } else {
    }
    return
  }
  func.func @transform_0(%arg0: i32, %arg1: i32) -> (i32, i32) {
    %c0_i32 = arith.constant 0 : i32
    %c0_i32_0 = arith.constant 0 : i32
    return %arg0, %c0_i32 : i32, i32
  }
  func.func @transform_1(%arg0: i32, %arg1: i32) -> (i32, i32) {
    %c0_i32 = arith.constant 0 : i32
    %c0_i32_0 = arith.constant 0 : i32
    return %arg0, %c0_i32 : i32, i32
  }
  func.func @transform_2(%arg0: i32, %arg1: i32) -> (i32, i32) {
    %c0_i32 = arith.constant 0 : i32
    %c0_i32_0 = arith.constant 0 : i32
    return %arg1, %c0_i32 : i32, i32
  }
  func.func @transform_3(%arg0: i32, %arg1: i32) -> (i32, i32) {
    %c0_i32 = arith.constant 0 : i32
    %c0_i32_0 = arith.constant 0 : i32
    %c0_i32_1 = arith.constant 0 : i32
    return %c0_i32, %c0_i32_0 : i32, i32
  }
  func.func @transform_4(%arg0: i32, %arg1: i32) -> (i32, i32) {
    %c0_i32 = arith.constant 0 : i32
    %c0_i32_0 = arith.constant 0 : i32
    return %arg0, %c0_i32 : i32, i32
  }
}

</mosaic_0001>

<bundles_post_ra>
// kernel: tpu_custom_call.1
= control target key start
LH: loop header
LB: loop body
LE: loop exit
PB: predicated region body
PF: predicated region fallthrough
CT: control target
= control target key end

     0   :  { %9 = vsyncpa [#allocation4], 0  ;;  %s399_s0 = inlined_call_operand.vmem [shape: s32[8,8], index: 0, kind: input, shape index: {}]   ;;  %s400_s1 = inlined_call_operand.vmem [shape: s32[8,1], index: 1, kind: input, shape index: {}]   ;;  %s401_s2 = inlined_call_operand.hbm [shape: f32[64,128], index: 2, kind: input, shape index: {}]   ;;  %s402_s3 = inlined_call_operand.vmem [shape: f32[1,128], index: 3, kind: input, shape index: {}]   ;;  %s403_s4 = inlined_call_operand.hbm [shape: f32[8,128], index: 4, kind: output, shape index: {}]  }
   0x1   :  { %10 = vsyncpa [#allocation5], 0  ;;  %s328_s15 = smov [#allocation3]  }
   0x2   :  { %s20_s16 = sshll.u32 %s328_s15, 4  ;;  %s21_s16 = int_to_ptr.vmem [resolvable:$true] %s20_s16 }
   0x3   :  { %s292_s17 = scalar_lea.vmem %s21_s16, 1024  ;;  %p297_p1 = scmp.lt.s32.totalorder %s21_s16, %s21_s16 }
   0x4   :  { %p293_p0 = scmp.ne.s32.totalorder %s21_s16, %s292_s17  ;;  %p298_p2 = scmp.lt.s32.totalorder %s292_s17, %s292_s17 }
   0x6   :  { %p299_p3 = por %p298_p2, %p297_p1 }
   0x8   :  { %p300_p4 = pnand %p299_p3, %p293_p0 }
   0xa   :  { %303 = shalt.err (!%p300_p4)
}
   0xb   :  { %s329_s18 = smov 128   ;;  %s330_s19 = smov 8  }
   0xc   :  { %26 = dma.hbm_to_vmem [thread:$0]  %s401_s2, 1024, %s21_s16, [#allocation4], %s329_s18, %s329_s18, %s330_s19  }
   0xd   :  { %324 = dma.done.wait [#allocation4], 1024  }
   0xe   :  { %325 = vsyncadd [#allocation4], 4294966272  ;;  %v331_v0 = vmov 2   ;;  %v332_v1 = vmov 0   ;;  %v333_v2 = vmov 0.0   ;;  %v42_v3 = vld [vmem:[%s399_s0] sm:$0xff]  ;;  %v37_v21 = vlaneseq }
   0xf   :  { %275 = vset.pattern.permute.xlu1 %v331_v0  ;;  %273 = vset.pattern.permute.xlu0 %v332_v1  ;;  %v334_v4 = vmov 3   ;;  %v335_v5 = vmov 1   ;;  %v107_v6 = vld [vmem:[#allocation3 + $0x38] sm:$0xff]  ;;  %v106_v7 = vld [vmem:[#allocation3 + $0x30] sm:$0xff]  ;;  %v336_v8 = vmov 4   ;;  %v337_v9 = vmov 5  }
  0x10   :  { %240 = vmatprep.subr.mxu0 %v333_v2  ;;  %58 = vperm.xlu1 %275, %v42_v3   ;;  %v105_v10 = vld [vmem:[#allocation3 + $0x28] sm:$0xff]  ;;  %v104_v11 = vld [vmem:[#allocation3 + $0x20] sm:$0xff]  ;;  %v103_v12 = vld [vmem:[#allocation3 + $0x18] sm:$0xff]  ;;  %v338_v13 = vmov 6   ;;  %v339_v16 = vmov 7   ;;  %vm340_vm0 = vmmov 0  }
  0x11   :  { %44 = vperm.xlu0 %273, %v42_v3   ;;  %241 = vmatpush3.msra.mxu0 %v107_v6  ;;  %v102_v14 = vld [vmem:[#allocation3 + $0x10] sm:$0xff]  ;;  %v101_v15 = vld [vmem:[#allocation3 + $0x8] sm:$0xff]  ;;  %v100_v17 = vld [vmem:[#allocation3] sm:$0xff]  ;;  %v38_v24 = vand.u32 127, %v37_v21  ;;  %vm108_vm9 = vcmask 523264   ;;  %s341_s25 = smov [#allocation6]  }
  0x12   :  { %242 = vmatprep.subr.mxu0 %v333_v2  ;;  %v187_v18 = vld [vmem:[%s400_s1] sm:$0xff]  ;;  %256 = vmatprep.mubr.msk.f32.mxu0 %vm340_vm0, %v333_v2  ;;  %s212_s26 = sshll.u32 %s341_s25, 4  ;;  %s213_s26 = int_to_ptr.vmem [resolvable:$true] %s212_s26 }
  0x13   :  { %243 = vmatpush3.msra.mxu0 %v106_v7  ;;  %v188_v19 = vcvt.s32.f32 %v187_v18  ;;  %v230_v48 = vld [vmem:[%s402_s3] ss:$0 sm:$0xff]  ;;  %s304_s27 = scalar_lea.vmem %s213_s26, 128  ;;  %p309_p6 = scmp.lt.s32.totalorder %s213_s26, %s213_s26 }
  0x14   :  { %276 = vset.pattern.permute.xlu1 %v334_v4  ;;  %244 = vmatprep.subr.mxu0 %v333_v2  ;;  %p305_p5 = scmp.ne.s32.totalorder %s213_s26, %s304_s27  ;;  %p310_p7 = scmp.lt.s32.totalorder %s304_s27, %s304_s27 }
  0x15   :  { %274 = vset.pattern.permute.xlu0 %v335_v5  ;;  %65 = vperm.xlu1 %276, %v42_v3   ;;  %282 = vrcp.f32 %v188_v19 }
  0x16   :  { %51 = vperm.xlu0 %274, %v42_v3   ;;  %245 = vmatpush3.msra.mxu0 %v105_v10  ;;  %p311_p8 = por %p310_p7, %p309_p6 }
  0x17   :  { %246 = vmatprep.subr.mxu0 %v333_v2 }
  0x18   :  { %247 = vmatpush3.msra.mxu0 %v104_v11  ;;  %p312_p9 = pnand %p311_p8, %p305_p5 }
  0x19   :  { %277 = vset.pattern.permute.xlu1 %v336_v8  ;;  %248 = vmatprep.subr.mxu0 %v333_v2 }
  0x1a   :  { %278 = vset.pattern.permute.xlu0 %v337_v9  ;;  %72 = vperm.xlu1 %277, %v42_v3  }
  0x1b   :  { %79 = vperm.xlu0 %278, %v42_v3   ;;  %249 = vmatpush3.msra.mxu0 %v103_v12 }
  0x1c   :  { %250 = vmatprep.subr.mxu0 %v333_v2 }
  0x1d   :  { %251 = vmatpush3.msra.mxu0 %v102_v14 }
  0x1e   :  { %279 = vset.pattern.permute.xlu1 %v338_v13  ;;  %252 = vmatprep.subr.mxu0 %v333_v2 }
  0x1f   :  { %86 = vperm.xlu1 %279, %v42_v3   ;;  %281 = vset.pattern.permute.xlu0 %v332_v1 }
  0x20   :  { %253 = vmatpush3.msra.mxu0 %v101_v15 }
  0x21   :  { %254 = vmatprep.subr.mxu0 %v333_v2 }
  0x22   :  { %255 = vmatpush3.msra.mxu0 %v100_v17  ;;  %v283_v20 = vpop.eup %282 }
  0x23   :  { %280 = vset.pattern.permute.xlu1 %v339_v16  ;;  %193 = vperm.xlu0 %281, %v283_v20  }
  0x24   :  { %93 = vperm.xlu1 %280, %v42_v3  }
  0x8b   :  { %v59_v22 = vpop.permute.xlu1 %58 }
  0x8c   :  { %v45_v23 = vpop.permute.xlu0 %44  ;;  %vm60_vm2 = vcmp.eq.s32.totalorder %v59_v22, %v38_v24 }
  0x8d   :  { %vm46_vm1 = vcmp.eq.s32.totalorder %v45_v23, %v38_v24  ;;  %v223_v30 = vsel %vm60_vm2, 1.0, %v333_v2 }
  0x8e   :  { %v221_v27 = vsel %vm46_vm1, 1.0, %v333_v2 }
  0x90   :  { %v66_v25 = vpop.permute.xlu1 %65 }
  0x91   :  { %v52_v26 = vpop.permute.xlu0 %51  ;;  %vm67_vm4 = vcmp.eq.s32.totalorder %v66_v25, %v38_v24 }
  0x92   :  { %vm53_vm3 = vcmp.eq.s32.totalorder %v52_v26, %v38_v24  ;;  %v224_v34 = vsel %vm67_vm4, 1.0, %v333_v2 }
  0x93   :  { %v222_v28 = vsel %vm53_vm3, 1.0, %v333_v2 }
  0x94   :  { %v56_v29 = vadd.f32 %v222_v28, %v221_v27 }
  0x95   :  { %v73_v32 = vpop.permute.xlu1 %72 }
  0x96   :  { %v63_v31 = vadd.f32 %v223_v30, %v56_v29  ;;  %v80_v33 = vpop.permute.xlu0 %79  ;;  %vm74_vm5 = vcmp.eq.s32.totalorder %v73_v32, %v38_v24 }
  0x97   :  { %vm81_vm6 = vcmp.eq.s32.totalorder %v80_v33, %v38_v24  ;;  %v225_v36 = vsel %vm74_vm5, 1.0, %v333_v2 }
  0x98   :  { %v70_v35 = vadd.f32 %v224_v34, %v63_v31  ;;  %v226_v38 = vsel %vm81_vm6, 1.0, %v333_v2 }
  0x9a   :  { %v77_v37 = vadd.f32 %v225_v36, %v70_v35  ;;  %v87_v39 = vpop.permute.xlu1 %86 }
  0x9b   :  { %vm88_vm7 = vcmp.eq.s32.totalorder %v87_v39, %v38_v24 }
  0x9c   :  { %v84_v40 = vadd.f32 %v226_v38, %v77_v37  ;;  %v227_v41 = vsel %vm88_vm7, 1.0, %v333_v2 }
  0x9e   :  { %v91_v43 = vadd.f32 %v227_v41, %v84_v40  ;;  %v194_v46 = vpop.permute.xlu0 %193 }
  0x9f   :  { %v94_v42 = vpop.permute.xlu1 %93 }
  0xa0   :  { %vm95_vm8 = vcmp.eq.s32.totalorder %v94_v42, %v38_v24 }
  0xa1   :  { %v228_v44 = vsel %vm95_vm8, 1.0, %v333_v2 }
  0xa2   :  { %v98_v45 = vadd.f32 %v228_v44, %v91_v43 }
  0xa4   :  { %257 = vmatmul.mubr.msk.f32.vlgmr.msra.gmra.mxu0 %vm108_vm9, %v98_v45 }
 0x164   :  { %v178_v47 = vpop.f32.mrf.mxu0 }
 0x165   :  { %v196_v49 = vmul.f32 %v194_v46, %v178_v47 }
 0x166   :  { %v258_v50 = vpop.f32.mrf.mxu0 }
 0x167   :  { %v204_v51 = vadd.f32 %v230_v48, %v196_v49 }
 0x169   :  { %205 = vst [vmem:[#allocation6] sm:$0xff] %v204_v51 }
 0x16a   :  { %315 = shalt.err (!%p312_p9)
}
 0x16b   :  { %215 = dma.vmem_to_hbm [thread:$0]  %s213_s26, 128, %s403_s4, [#allocation5]  }
 0x16c   :  { %326 = dma.done.wait [#allocation5], 128  }
 0x16d   :  { %327 = vsyncadd [#allocation5], 4294967168 }
 0x16e   :  { %219 = vsyncpa [#allocation4], 1 }
 0x16f   :  { %220 = vsyncpa [#allocation5], 1 }

</bundles_post_ra>
